<compile_context>
chip_gen: v6e
topology: v6e:2x2x1
jax: 0.10.0
libtpu: 0.0.40
codegen_flags: <defaults>
</compile_context>

<pallas_src>
from functools import partial

import jax
import jax.numpy as jnp
from jax.experimental import pallas as pl
from jax.experimental.pallas import tpu as pltpu


def _gem_kernel(p_ref, x_ref, o_ref, *, eps, inv_hw):
    # p_ref: SMEM scalar (shape (1,)); x_ref: (TILE_BC, HW) VMEM; o_ref: (TILE_BC, 1) VMEM
    p = p_ref[0]
    x = jnp.maximum(x_ref[...].astype(jnp.float32), jnp.float32(eps))  # clamp(min=eps)
    scale = jnp.float32(inv_hw)

    @pl.when(p == jnp.float32(3.0))
    def _p3_fast_path():
        # GeM default p=3: two VPU multiplies per element, no EUP transcendentals.
        xp = x * x * x
        mean = jnp.sum(xp, axis=-1, keepdims=True) * scale
        # The final 1/p root only touches the tiny (TILE_BC, 1) pooled vector.
        o_ref[...] = jnp.power(mean, 1.0 / p).astype(o_ref.dtype)

    @pl.when(p != jnp.float32(3.0))
    def _generic_path():
        # Generic runtime exponent: exp(p * log(x)) on the EUP.
        xp = jnp.power(x, p)
        mean = jnp.sum(xp, axis=-1, keepdims=True) * scale
        o_ref[...] = jnp.power(mean, 1.0 / p).astype(o_ref.dtype)


def _pick_tile_bc(bc, hw, itemsize=4, vmem_budget=12 * 1024 * 1024):
    """Rows per grid step: multiple of 8 (f32 sublane), double-buffered input <= budget."""
    if bc <= 8:
        return bc  # block equals full array dim -> no (8,128) divisibility issue
    max_rows = max(8, vmem_budget // (2 * hw * itemsize))
    tile = min(1024, max_rows, bc)
    return max(8, (tile // 8) * 8)


def gem_pallas(x, p, eps=1e-6):
    """x: (B, C, H, W) float32, p: (1,) float32 -> (B, C, 1, 1) float32."""
    B, C, H, W = x.shape
    bc, hw = B * C, H * W
    x2 = x.reshape(bc, hw)

    tile_bc = _pick_tile_bc(bc, hw)
    grid = (pl.cdiv(bc, tile_bc),)

    cost = pl.CostEstimate(
        flops=4 * bc * hw,                 # clamp + cubes/adds for the fast path
        transcendentals=2 * bc * hw,       # generic-path exp/log upper bound
        bytes_accessed=4 * bc * hw + 4 * bc,
    )

    out = pl.pallas_call(
        partial(_gem_kernel, eps=eps, inv_hw=1.0 / hw),
        out_shape=jax.ShapeDtypeStruct((bc, 1), x.dtype),
        grid=grid,
        in_specs=[
            pl.BlockSpec(memory_space=pltpu.SMEM),           # p (scalar parameter)
            pl.BlockSpec((tile_bc, hw), lambda i: (i, 0)),   # x rows tile in VMEM
        ],
        out_specs=pl.BlockSpec((tile_bc, 1), lambda i: (i, 0)),
        compiler_params=pltpu.CompilerParams(
            dimension_semantics=("parallel",),               # rows independent -> v7x 2-TC shard
            vmem_limit_bytes=32 * 1024 * 1024,               # raise v5e's 16 MiB default scoped
        ),
        cost_estimate=cost,
    )(p, x2)

    return out.reshape(B, C, 1, 1)


def gem_reference(x, p, eps=1e-6):
    # Pure-JAX reference matching torch gem().
    xc = jnp.maximum(x, eps)                     # clamp(min=eps)
    xp = jnp.power(xc, p.reshape(()))
    pooled = jnp.mean(xp, axis=(-2, -1), keepdims=True)
    return jnp.power(pooled, 1.0 / p.reshape(()))


if __name__ == "__main__":
    key = jax.random.PRNGKey(0)
    B, C, H, W = 2, 4, 16, 16
    x = jax.random.normal(key, (B, C, H, W), dtype=jnp.float32)
    eps = 1e-6

    # Deterministic parameter init matching GeM.__init__(p=3, p_trainable=True):
    #   self.p = nn.Parameter(torch.ones(1) * 3)
    p3 = jnp.ones((1,), dtype=jnp.float32) * 3.0
    out3 = gem_pallas(x, p3, eps)
    jax.block_until_ready(out3)
    ref3 = gem_reference(x, p3, eps)
    assert out3.shape == (B, C, 1, 1), out3.shape
    assert jnp.allclose(out3, ref3, rtol=1e-5, atol=1e-5), float(
        jnp.max(jnp.abs(out3 - ref3))
    )

    # Also exercise the generic (p != 3) path.
    p_gen = jnp.ones((1,), dtype=jnp.float32) * 2.5
    out_g = gem_pallas(x, p_gen, eps)
    jax.block_until_ready(out_g)
    ref_g = gem_reference(x, p_gen, eps)
    assert jnp.allclose(out_g, ref_g, rtol=1e-5, atol=1e-5), float(
        jnp.max(jnp.abs(out_g - ref_g))
    )

    print("KERNEL_OK")
</pallas_src>

<mosaic_0001>
module attributes {stable_mosaic.version = 11 : i64} {
  func.func @_gem_kernel(%arg0: i32, %arg1: memref<1xf32, #tpu.memory_space<smem>>, %arg2: memref<8x256xf32, #tpu.memory_space<vmem>>, %arg3: memref<8x1xf32, #tpu.memory_space<vmem>>) attributes {dimension_semantics = [#tpu.dimension_semantics<parallel>], iteration_bounds = array<i64: 1>, scalar_prefetch = 0 : i64, scratch_operands = 0 : i64, tpu.core_type = #tpu.core_type<tc>, window_params = [{transform_indices = @transform_0, window_bounds = array<i64: 1>}, {transform_indices = @transform_1, window_bounds = array<i64: 8, 256>}, {transform_indices = @transform_2, window_bounds = array<i64: 8, 1>}]} {
    %c0 = arith.constant 0 : index
    %0 = memref.load %arg1[%c0] : memref<1xf32, #tpu.memory_space<smem>>
    %c0_0 = arith.constant 0 : index
    %c0_1 = arith.constant 0 : index
    %1 = vector.load %arg2[%c0_0, %c0_1] : memref<8x256xf32, #tpu.memory_space<vmem>>, vector<8x256xf32>
    %cst = arith.constant 9.99999997E-7 : f32
    %2 = vector.broadcast %cst : f32 to vector<8x256xf32>
    %3 = arith.maximumf %1, %2 : vector<8x256xf32>
    %cst_2 = arith.constant 3.000000e+00 : f32
    %4 = arith.cmpf oeq, %0, %cst_2 : f32
    %5 = arith.extui %4 : i1 to i32
    %cst_3 = arith.constant 3.906250e-03 : f32
    %c0_i32 = arith.constant 0 : i32
    %6 = arith.cmpi ne, %5, %c0_i32 : i32
    scf.if %6 {
      %10 = arith.mulf %3, %3 : vector<8x256xf32>
      %11 = arith.mulf %10, %3 : vector<8x256xf32>
      %cst_7 = arith.constant dense<0.000000e+00> : vector<8xf32>
      %12 = vector.multi_reduction <add>, %11, %cst_7 [1] : vector<8x256xf32> to vector<8xf32>
      %13 = vector.shape_cast %12 : vector<8xf32> to vector<8x1xf32>
      %14 = vector.broadcast %cst_3 : f32 to vector<8x1xf32>
      %15 = arith.mulf %13, %14 : vector<8x1xf32>
      %cst_8 = arith.constant 1.000000e+00 : f32
      %16 = arith.divf %cst_8, %0 : f32
      %17 = vector.broadcast %16 : f32 to vector<8x1xf32>
      %18 = math.powf %15, %17 : vector<8x1xf32>
      %c0_9 = arith.constant 0 : index
      %c0_10 = arith.constant 0 : index
      %19 = vector.load %arg3[%c0_9, %c0_10] : memref<8x1xf32, #tpu.memory_space<vmem>>, vector<8x1xf32>
      tpu.vector_store %arg3[%c0_9, %c0_10], %18 {strides = array<i32>} : memref<8x1xf32, #tpu.memory_space<vmem>>, vector<8x1xf32>,
    } else {
    }
    %cst_4 = arith.constant 3.000000e+00 : f32
    %7 = arith.cmpf one, %0, %cst_4 : f32
    %8 = arith.extui %7 : i1 to i32
    %cst_5 = arith.constant 3.906250e-03 : f32
    %c0_i32_6 = arith.constant 0 : i32
    %9 = arith.cmpi ne, %8, %c0_i32_6 : i32
    scf.if %9 {
      %10 = vector.broadcast %0 : f32 to vector<8x256xf32>
      %11 = math.powf %3, %10 : vector<8x256xf32>
      %cst_7 = arith.constant dense<0.000000e+00> : vector<8xf32>
      %12 = vector.multi_reduction <add>, %11, %cst_7 [1] : vector<8x256xf32> to vector<8xf32>
      %13 = vector.shape_cast %12 : vector<8xf32> to vector<8x1xf32>
      %14 = vector.broadcast %cst_5 : f32 to vector<8x1xf32>
      %15 = arith.mulf %13, %14 : vector<8x1xf32>
      %cst_8 = arith.constant 1.000000e+00 : f32
      %16 = arith.divf %cst_8, %0 : f32
      %17 = vector.broadcast %16 : f32 to vector<8x1xf32>
      %18 = math.powf %15, %17 : vector<8x1xf32>
      %c0_9 = arith.constant 0 : index
      %c0_10 = arith.constant 0 : index
      %19 = vector.load %arg3[%c0_9, %c0_10] : memref<8x1xf32, #tpu.memory_space<vmem>>, vector<8x1xf32>
      tpu.vector_store %arg3[%c0_9, %c0_10], %18 {strides = array<i32>} : memref<8x1xf32, #tpu.memory_space<vmem>>, vector<8x1xf32>,
    } else {
    }
    return
  }
  func.func @transform_0(%arg0: i32) -> i32 {
    %c0_i32 = arith.constant 0 : i32
    %c0_i32_0 = arith.constant 0 : i32
    return %c0_i32 : i32
  }
  func.func @transform_1(%arg0: i32) -> (i32, i32) {
    %c0_i32 = arith.constant 0 : i32
    %c0_i32_0 = arith.constant 0 : i32
    return %arg0, %c0_i32 : i32, i32
  }
  func.func @transform_2(%arg0: i32) -> (i32, i32) {
    %c0_i32 = arith.constant 0 : i32
    %c0_i32_0 = arith.constant 0 : i32
    return %arg0, %c0_i32 : i32, i32
  }
}

</mosaic_0001>

<bundles_post_ra>
// kernel: tpu_custom_call.1
= control target key start
LH: loop header
LB: loop body
LE: loop exit
PB: predicated region body
PF: predicated region fallthrough
CT: control target
= control target key end

     0   :  { %8 = vsyncpa [#allocation4], 0  ;;  %s330_s9 = smov [#allocation3]   ;;  %s578_s0 = inlined_call_operand.<no memory space> [shape: f32[1], index: 0, kind: input, shape index: {}]   ;;  %s579_s1 = inlined_call_operand.hbm [shape: f32[8,256], index: 1, kind: input, shape index: {}]   ;;  %s580_s2 = inlined_call_operand.vmem [shape: f32[8,1], index: 2, kind: output, shape index: {}]  }
   0x1   :  { %s17_s10 = sshll.u32 %s330_s9, 4  ;;  %s18_s10 = int_to_ptr.vmem [resolvable:$true] %s17_s10 }
   0x2   :  { %s316_s11 = scalar_lea.vmem %s18_s10, 256  ;;  %p321_p1 = scmp.lt.s32.totalorder %s18_s10, %s18_s10 }
   0x3   :  { %p317_p0 = scmp.ne.s32.totalorder %s18_s10, %s316_s11  ;;  %p322_p2 = scmp.lt.s32.totalorder %s316_s11, %s316_s11 }
   0x5   :  { %p323_p3 = por %p322_p2, %p321_p1 }
   0x7   :  { %p324_p4 = pnand %p323_p3, %p317_p0 }
   0x9   :  { %327 = shalt.err (!%p324_p4)
}
   0xa   :  { %20 = dma.hbm_to_vmem [thread:$0]  %s579_s1, 256, %s18_s10, [#allocation4]  }
   0xb   :  { %328 = dma.done.wait [#allocation4], 256  }
   0xc   :  { %329 = vsyncadd [#allocation4], 4294967040  ;;  %p29_p5 = scmp.eq.f32.partialorder %s578_s0, 3.0  ;;  %v25_v0 = vld [vmem:[#allocation3] sm:$0xff]  ;;  %v26_v1 = vld [vmem:[#allocation3 + $0x8] sm:$0xff] }
   0xd   :  { %v356_v2 = vmax.f32 %v25_v0, 1e-06  ;;  %v358_v3 = vmax.f32 %v26_v1, 1e-06  ;;  %v41_v6 = vstv (%p29_p5), %s578_s0  ;;  %v331_v23 = vmov (%p29_p5), 2139095040  }
   0xe   :  { %32 = sbr.rel (!%p29_p5) target bundleno = 204 (0xcc), region = 17  ;;  %288 = vrcp.f32 (%p29_p5), %v41_v6  ;;  %v332_v28 = vmov (%p29_p5), 0  }
   0xf   :  { %v33_v4 = vmul.f32 (%p29_p5), %v356_v2, %v356_v2  ;;  %v34_v5 = vmul.f32 (%p29_p5), %v358_v3, %v358_v3 }
  0x11   :  { %v35_v7 = vmul.f32 (%p29_p5), %v33_v4, %v356_v2  ;;  %v36_v8 = vmul.f32 (%p29_p5), %v34_v5, %v358_v3 }
  0x13   :  { %v37_v9 = vadd.f32 %v36_v8, %v35_v7 }
  0x15   :  { %38 = vadd.xlane.f32.xlu0 %v37_v9 }
  0x1b   :  { %v289_v10 = vpop.eup %288 }
  0x1c   :  { %71 = vpush %v289_v10 }
  0x4d   :  { %s72_s17 = spop %71 }
  0x4e   :  { %v44_v14 = vstv %s72_s17 }
  0x4f   :  { %v77_v15 = vand.u32 2147483647, %v44_v14  ;;  %v82_v17 = vtrunc.f32 %v44_v14  ;;  %vm81_vm5 = vcmp.lt.f32.partialorder %v44_v14, 0 }
  0x50   :  { %v113_v24 = vsel %vm81_vm5, 0, %v331_v23  ;;  %v101_v29 = vsel %vm81_vm5, 2139095040, %v332_v28 }
  0x51   :  { %v86_v16 = vtrunc.f32 %v77_v15  ;;  %vm78_vm0 = vcmp.eq.f32.partialorder %v77_v15, 2139095040  ;;  %vm83_vm1 = vcmp.ne.f32.partialorder %v44_v14, %v82_v17  ;;  %vm85_vm7 = vcmp.lt.f32.partialorder %v77_v15, 1266679808 }
  0x52   :  { %vm370_vm2 = vmor %vm83_vm1, %vm78_vm0  ;;  %v114_v26 = vxor.u32 2147483648, %v113_v24 }
  0x53   :  { %v87_v18 = vcvt.f32.s32 %v86_v16  ;;  %vm90_vm4 = vmneg %vm370_vm2 }
  0x55   :  { %v88_v21 = vand.u32 1, %v87_v18 }
  0x57   :  { %vm89_vm3 = vcmp.eq.s32.totalorder %v88_v21, 1 }
  0x58   :  { %vm91_vm8 = vmand %vm89_vm3, %vm90_vm4  ;;  %vm119_vm3 = vcmp.ne.f32.partialorder %v44_v14, %v44_v14 }
  0x59   :  { %vm378_vm11 = vmand %vm85_vm7, %vm91_vm8  ;;  %vm79_vm8 = vcmp.eq.f32.partialorder %v44_v14, 0 }
  0x5a   :  { %v115_v33 = vsel %vm378_vm11, %v114_v26, %v113_v24 }
  0x9e   :  { %v39_v11 = vpop.xlane.xlu0 %38 }
  0x9f   :  { %v40_v12 = vmul.f32 0.00390625, %v39_v11 }
  0xa1   :  { %v73_v13 = vand.u32 2147483647, %v40_v12  ;;  %vm94_vm9 = vcmp.eq.f32.partialorder %v40_v12, 0  ;;  %vm93_vm12 = vcmp.lt.f32.partialorder %v40_v12, 0  ;;  %vm96_vm1 = vcmp.lt.s32.totalorder %v40_v12, 0 }
  0xa2   :  { %vm106_vm13 = vmand %vm81_vm5, %vm94_vm9  ;;  %vm118_vm7 = vcmp.ne.f32.partialorder %v40_v12, %v40_v12  ;;  %v116_v38 = vsel %vm93_vm12, %v115_v33, %v113_v24 }
  0xa3   :  { %290 = vlog2.f32 %v73_v13  ;;  %vm97_vm6 = vcmp.gt.f32.partialorder %v73_v13, 1065353216  ;;  %vm99_vm15 = vmand %vm93_vm12, %vm370_vm2  ;;  %vm98_vm2 = vcmp.eq.f32.partialorder %v73_v13, 2139095040 }
  0xa4   :  { %vm107_vm10 = vmxor %vm81_vm5, %vm97_vm6  ;;  %vm110_vm6 = vcmp.eq.f32.partialorder %v40_v12, 3212836864 }
  0xa5   :  { %vm108_vm14 = vmor %vm106_vm13, %vm107_vm10  ;;  %vm95_vm10 = vcmp.eq.f32.partialorder %v40_v12, 1065353216  ;;  %vm46_vm13 = vcmask 7168  }
  0xa6   :  { %v109_v32 = vsel %vm108_vm14, 2139095040, %v332_v28  ;;  %vm103_vm4 = vmand %vm96_vm1, %vm378_vm11  ;;  %vm80_vm14 = vcmp.eq.f32.partialorder %v44_v14, 1065353216 }
  0xa7   :  { %v111_v36 = vsel %vm110_vm6, 1065353216, %v109_v32  ;;  %vm120_vm5 = vmor %vm118_vm7, %vm119_vm3 }
  0xb0   :  { %v291_v19 = vpop.eup %290 }
  0xb1   :  { %v75_v20 = vmul.f32 %v291_v19, %v44_v14 }
  0xb3   :  { %292 = vpow2.f32 %v75_v20 }
  0xc0   :  { %v293_v27 = vpop.eup %292 }
  0xc1   :  { %v100_v30 = vsel %vm99_vm15, 2143289344, %v293_v27 }
  0xc2   :  { %v102_v31 = vsel %vm94_vm9, %v101_v29, %v100_v30  ;;  %vm122_vm9 = vmor %vm95_vm10, %vm79_vm8 }
  0xc3   :  { %v104_v34 = vxor.u32 2147483648, %v102_v31 }
  0xc5   :  { %v105_v35 = vsel %vm103_vm4, %v104_v34, %v102_v31 }
  0xc6   :  { %v112_v37 = vsel %vm78_vm0, %v111_v36, %v105_v35 }
  0xc7   :  { %v117_v39 = vsel %vm98_vm2, %v116_v38, %v112_v37 }
  0xc8   :  { %v121_v40 = vsel %vm120_vm5, 2143289344, %v117_v39 }
  0xc9   :  { %v123_v41 = vsel %vm122_vm9, 1065353216, %v121_v40 }
  0xca   :  { %v124_v42 = vsel %vm80_vm14, %v40_v12, %v123_v41 }
  0xcb   :  { %47 = vst.msk [vmem:[%s580_s2] sm:$0xff] %vm46_vm13, %v124_v42 }
  0xcc PF:  { %p48_p6 = scmp.ne.f32.partialorder %s578_s0, 3.0 }
  0xcd   :  { %v400_v43 = vand.u32 (%p48_p6), 2147483647, %v356_v2  ;;  %v406_v44 = vstv (%p48_p6), %s578_s0  ;;  %v409_v45 = vand.u32 (%p48_p6), 2147483647, %v358_v3  ;;  %vm146_vm1 = vcmp.eq.f32.partialorder (%p48_p6), %v356_v2, 0 }
  0xce   :  { %51 = sbr.rel (!%p48_p6) target bundleno = 433 (0x1b1), region = 21  ;;  %v412_v46 = vand.u32 (%p48_p6), 2147483647, %v406_v44  ;;  %v134_v48 = vtrunc.f32 (%p48_p6), %v406_v44  ;;  %vm133_vm15 = vcmp.lt.f32.partialorder (%p48_p6), %v406_v44, 0  ;;  %vm145_vm7 = vcmp.lt.f32.partialorder (%p48_p6), %v356_v2, 0 }
  0xcf   :  { %294 = vlog2.f32 (%p48_p6), %v400_v43  ;;  %vm149_vm3 = vcmp.gt.f32.partialorder (%p48_p6), %v400_v43, 1065353216  ;;  %vm438_vm8 = vmand (%p48_p6), %vm133_vm15, %vm146_vm1  ;;  %v333_v59 = vmov (%p48_p6), 2139095040   ;;  %vm581_vm13 = vcmp.eq.f32.partialorder (%p48_p6), %v358_v3, 0 }
  0xd0   :  { %296 = vlog2.f32 (%p48_p6), %v409_v45  ;;  %v138_v47 = vtrunc.f32 (%p48_p6), %v412_v46  ;;  %vm130_vm0 = vcmp.eq.f32.partialorder (%p48_p6), %v412_v46, 2139095040  ;;  %vm135_vm11 = vcmp.ne.f32.partialorder (%p48_p6), %v406_v44, %v134_v48  ;;  %vm444_vm10 = vmxor (%p48_p6), %vm133_vm15, %vm149_vm3 }
  0xd1   :  { %298 = vrcp.f32 (%p48_p6), %v406_v44  ;;  %vm423_vm12 = vmor (%p48_p6), %vm135_vm11, %vm130_vm0  ;;  %v165_v60 = vsel (%p48_p6), %vm133_vm15, 0, %v333_v59  ;;  %vm137_vm2 = vcmp.lt.f32.partialorder (%p48_p6), %v412_v46, 1266679808  ;;  %vm201_vm11 = vcmp.gt.f32.partialorder (%p48_p6), %v409_v45, 1065353216 }
  0xd2   :  { %v139_v50 = vcvt.f32.s32 (%p48_p6), %v138_v47  ;;  %vm142_vm6 = vmneg (%p48_p6), %vm423_vm12  ;;  %v166_v62 = vxor.u32 (%p48_p6), 2147483648, %v165_v60  ;;  %v334_v0 = vmov (%p48_p6), 0  }
  0xd3   :  { %vm456_vm9 = vmand %vm145_vm7, %vm423_vm12  ;;  %v153_v1 = vsel %vm133_vm15, 2139095040, %v334_v0 }
  0xd4   :  { %v140_v52 = vand.u32 1, %v139_v50  ;;  %vm160_vm14 = vmor %vm438_vm8, %vm444_vm10  ;;  %vm162_vm8 = vcmp.eq.f32.partialorder %v356_v2, 3212836864 }
  0xd5   :  { %v161_v6 = vsel %vm160_vm14, 2139095040, %v334_v0  ;;  %vm486_vm10 = vmxor %vm133_vm15, %vm201_vm11  ;;  %vm171_vm14 = vcmp.ne.f32.partialorder %v406_v44, %v406_v44  ;;  %vm131_vm11 = vcmp.eq.f32.partialorder %v406_v44, 0 }
  0xd6   :  { %vm141_vm4 = vcmp.eq.s32.totalorder %v140_v52, 1  ;;  %v163_v12 = vsel %vm162_vm8, 1065353216, %v161_v6 }
  0xd7   :  { %vm143_vm5 = vmand %vm141_vm4, %vm142_vm6  ;;  %vm148_vm4 = vcmp.lt.s32.totalorder %v356_v2, 0 }
  0xd8   :  { %vm466_vm3 = vmand %vm137_vm2, %vm143_vm5  ;;  %vm197_vm2 = vcmp.lt.f32.partialorder %v358_v3, 0 }
  0xd9   :  { %vm478_vm6 = vmand %vm133_vm15, %vm581_vm13  ;;  %v167_v9 = vsel %vm466_vm3, %v166_v62, %v165_v60  ;;  %vm170_vm15 = vcmp.ne.f32.partialorder %v356_v2, %v356_v2  ;;  %vm150_vm13 = vcmp.eq.f32.partialorder %v400_v43, 2139095040 }
  0xda   :  { %vm155_vm5 = vmand %vm148_vm4, %vm466_vm3  ;;  %v168_v13 = vsel %vm145_vm7, %v167_v9, %v165_v60  ;;  %vm214_vm7 = vcmp.eq.f32.partialorder %v358_v3, 3212836864  ;;  %v220_v25 = vsel %vm197_vm2, %v167_v9, %v165_v60 }
  0xdb   :  { %vm203_vm4 = vmand %vm197_vm2, %vm423_vm12 }
  0xdc   :  { %v295_v49 = vpop.eup %294  ;;  %vm519_vm8 = vmor %vm170_vm15, %vm171_vm14  ;;  %vm222_vm15 = vcmp.ne.f32.partialorder %v358_v3, %v358_v3 }
  0xdd   :  { %v127_v51 = vmul.f32 %v295_v49, %v406_v44  ;;  %v297_v54 = vpop.eup %296 }
  0xde   :  { %v179_v55 = vmul.f32 %v297_v54, %v406_v44  ;;  %v299_v56 = vpop.eup %298 }
  0xdf   :  { %300 = vpow2.f32 %v127_v51  ;;  %229 = vpush %v299_v56 }
  0xe0   :  { %302 = vpow2.f32 %v179_v55 }
  0xec   :  { %v301_v5 = vpop.eup %300 }
  0xed   :  { %v152_v8 = vsel %vm456_vm9, 2143289344, %v301_v5  ;;  %vm212_vm9 = vmor %vm478_vm6, %vm486_vm10  ;;  %vm200_vm6 = vcmp.lt.s32.totalorder %v358_v3, 0  ;;  %v303_v16 = vpop.eup %302  ;;  %vm602_vm10 = vcmp.eq.f32.partialorder %v358_v3, 0 }
  0xee   :  { %v154_v10 = vsel %vm146_vm1, %v153_v1, %v152_v8  ;;  %vm147_vm1 = vcmp.eq.f32.partialorder %v356_v2, 1065353216  ;;  %v213_v18 = vsel %vm212_vm9, 2139095040, %v334_v0  ;;  %v204_v20 = vsel %vm203_vm4, 2143289344, %v303_v16 }
  0xef   :  { %v156_v11 = vxor.u32 2147483648, %v154_v10  ;;  %vm174_vm12 = vmor %vm147_vm1, %vm131_vm11  ;;  %v206_v22 = vsel %vm602_vm10, %v153_v1, %v204_v20  ;;  %vm199_vm9 = vcmp.eq.f32.partialorder %v358_v3, 1065353216  ;;  %v215_v24 = vsel %vm214_vm7, 1065353216, %v213_v18 }
  0xf0   :  { %v208_v23 = vxor.u32 2147483648, %v206_v22  ;;  %vm132_vm1 = vcmp.eq.f32.partialorder %v406_v44, 1065353216  ;;  %vm226_vm4 = vmor %vm199_vm9, %vm131_vm11 }
  0xf1   :  { %v157_v14 = vsel %vm155_vm5, %v156_v11, %v154_v10  ;;  %vm207_vm5 = vmand %vm200_vm6, %vm466_vm3 }
  0xf2   :  { %v164_v17 = vsel %vm130_vm0, %v163_v12, %v157_v14  ;;  %v209_v27 = vsel %vm207_vm5, %v208_v23, %v206_v22  ;;  %vm224_vm3 = vmor %vm222_vm15, %vm171_vm14 }
  0xf3   :  { %v169_v19 = vsel %vm150_vm13, %v168_v13, %v164_v17  ;;  %vm202_vm13 = vcmp.eq.f32.partialorder %v409_v45, 2139095040  ;;  %v216_v28 = vsel %vm130_vm0, %v215_v24, %v209_v27 }
  0xf4   :  { %v173_v21 = vsel %vm519_vm8, 2143289344, %v169_v19  ;;  %v221_v29 = vsel %vm202_vm13, %v220_v25, %v216_v28 }
  0xf5   :  { %v175_v26 = vsel %vm174_vm12, 1065353216, %v173_v21  ;;  %v225_v31 = vsel %vm224_vm3, 2143289344, %v221_v29 }
  0xf6   :  { %v176_v30 = vsel %vm132_vm1, %v356_v2, %v175_v26  ;;  %v227_v32 = vsel %vm226_vm4, 1065353216, %v225_v31 }
  0xf7   :  { %v228_v33 = vsel %vm132_vm1, %v358_v3, %v227_v32 }
  0xf8   :  { %v55_v34 = vadd.f32 %v228_v33, %v176_v30 }
  0xfa   :  { %56 = vadd.xlane.f32.xlu0 %v55_v34 }
 0x110   :  { %s230_s0 = spop %229 }
 0x111   :  { %v62_v38 = vstv %s230_s0 }
 0x112   :  { %v235_v39 = vand.u32 2147483647, %v62_v38  ;;  %v240_v41 = vtrunc.f32 %v62_v38  ;;  %vm239_vm6 = vcmp.lt.f32.partialorder %v62_v38, 0 }
 0x113   :  { %v271_v45 = vsel %vm239_vm6, 0, %v333_v59  ;;  %v259_v49 = vsel %vm239_vm6, 2139095040, %v334_v0 }
 0x114   :  { %v244_v40 = vtrunc.f32 %v235_v39  ;;  %vm236_vm0 = vcmp.eq.f32.partialorder %v235_v39, 2139095040  ;;  %vm241_vm2 = vcmp.ne.f32.partialorder %v62_v38, %v240_v41  ;;  %vm243_vm12 = vcmp.lt.f32.partialorder %v235_v39, 1266679808 }
 0x115   :  { %vm553_vm14 = vmor %vm241_vm2, %vm236_vm0  ;;  %v272_v47 = vxor.u32 2147483648, %v271_v45 }
 0x116   :  { %v245_v42 = vcvt.f32.s32 %v244_v40  ;;  %vm248_vm8 = vmneg %vm553_vm14 }
 0x118   :  { %v246_v44 = vand.u32 1, %v245_v42 }
 0x11a   :  { %vm247_vm11 = vcmp.eq.s32.totalorder %v246_v44, 1 }
 0x11b   :  { %vm249_vm10 = vmand %vm247_vm11, %vm248_vm8  ;;  %vm277_vm11 = vcmp.ne.f32.partialorder %v62_v38, %v62_v38 }
 0x11c   :  { %vm560_vm9 = vmand %vm243_vm12, %vm249_vm10  ;;  %vm237_vm10 = vcmp.eq.f32.partialorder %v62_v38, 0 }
 0x11d   :  { %v273_v53 = vsel %vm560_vm9, %v272_v47, %v271_v45 }
 0x183   :  { %v57_v35 = vpop.xlane.xlu0 %56 }
 0x184   :  { %v58_v36 = vmul.f32 0.00390625, %v57_v35 }
 0x186   :  { %v231_v37 = vand.u32 2147483647, %v58_v36  ;;  %vm252_vm5 = vcmp.eq.f32.partialorder %v58_v36, 0  ;;  %vm251_vm13 = vcmp.lt.f32.partialorder %v58_v36, 0  ;;  %vm254_vm2 = vcmp.lt.s32.totalorder %v58_v36, 0 }
 0x187   :  { %vm264_vm1 = vmand %vm239_vm6, %vm252_vm5  ;;  %vm276_vm12 = vcmp.ne.f32.partialorder %v58_v36, %v58_v36  ;;  %v274_v58 = vsel %vm251_vm13, %v273_v53, %v271_v45 }
 0x188   :  { %304 = vlog2.f32 %v231_v37  ;;  %vm255_vm7 = vcmp.gt.f32.partialorder %v231_v37, 1065353216  ;;  %vm257_vm4 = vmand %vm251_vm13, %vm553_vm14  ;;  %vm256_vm14 = vcmp.eq.f32.partialorder %v231_v37, 2139095040 }
 0x189   :  { %vm265_vm15 = vmxor %vm239_vm6, %vm255_vm7  ;;  %vm268_vm7 = vcmp.eq.f32.partialorder %v58_v36, 3212836864 }
 0x18a   :  { %vm266_vm3 = vmor %vm264_vm1, %vm265_vm15  ;;  %vm253_vm15 = vcmp.eq.f32.partialorder %v58_v36, 1065353216  ;;  %vm64_vm1 = vcmask 7168  }
 0x18b   :  { %v267_v52 = vsel %vm266_vm3, 2139095040, %v334_v0  ;;  %vm261_vm8 = vmand %vm254_vm2, %vm560_vm9  ;;  %vm238_vm3 = vcmp.eq.f32.partialorder %v62_v38, 1065353216 }
 0x18c   :  { %v269_v56 = vsel %vm268_vm7, 1065353216, %v267_v52  ;;  %vm278_vm6 = vmor %vm276_vm12, %vm277_vm11 }
 0x195   :  { %v305_v43 = vpop.eup %304 }
 0x196   :  { %v233_v2 = vmul.f32 %v305_v43, %v62_v38 }
 0x198   :  { %306 = vpow2.f32 %v233_v2 }
 0x1a5   :  { %v307_v48 = vpop.eup %306 }
 0x1a6   :  { %v258_v50 = vsel %vm257_vm4, 2143289344, %v307_v48 }
 0x1a7   :  { %v260_v51 = vsel %vm252_vm5, %v259_v49, %v258_v50  ;;  %vm280_vm5 = vmor %vm253_vm15, %vm237_vm10 }
 0x1a8   :  { %v262_v54 = vxor.u32 2147483648, %v260_v51 }
 0x1aa   :  { %v263_v55 = vsel %vm261_vm8, %v262_v54, %v260_v51 }
 0x1ab   :  { %v270_v57 = vsel %vm236_vm0, %v269_v56, %v263_v55 }
 0x1ac   :  { %v275_v59 = vsel %vm256_vm14, %v274_v58, %v270_v57 }
 0x1ad   :  { %v279_v60 = vsel %vm278_vm6, 2143289344, %v275_v59 }
 0x1ae   :  { %v281_v61 = vsel %vm280_vm5, 1065353216, %v279_v60 }
 0x1af   :  { %v282_v62 = vsel %vm238_vm3, %v58_v36, %v281_v61 }
 0x1b0   :  { %65 = vst.msk [vmem:[%s580_s2] sm:$0xff] %vm64_vm1, %v282_v62 }
 0x1b1 PF:  { %70 = vsyncpa [#allocation4], 1 }

</bundles_post_ra>
